<compile_context>
chip_gen: v6e
topology: v6e:2x2x1
jax: 0.10.0
libtpu: 0.0.40
codegen_flags: <defaults>
</compile_context>

<pallas_src>
import jax
import jax.numpy as jnp
from jax import lax
from jax.experimental import pallas as pl
from jax.experimental.pallas import tpu as pltpu


def _conf_linear_kernel(x_ref, w1_ref, b1_ref, w2_ref, b2_ref, w3_ref, b3_ref,
                        wb_ref, bb_ref, z_ref, d_ref, logits_ref):
    TB, N, _ = x_ref.shape
    E = w3_ref.shape[1]
    NBL = wb_ref.shape[1]

    # --- three Linear + ReLU encoder layers, fused over TB samples so the MXU
    #     sees (TB*N, K) operands instead of per-sample (N, K) slivers.
    x = x_ref[...].reshape(TB * N, N)
    h = jnp.maximum(
        jnp.dot(x, w1_ref[...], preferred_element_type=jnp.float32) + b1_ref[...], 0.0)
    h = jnp.maximum(
        jnp.dot(h, w2_ref[...], preferred_element_type=jnp.float32) + b2_ref[...], 0.0)
    z = jnp.maximum(
        jnp.dot(h, w3_ref[...], preferred_element_type=jnp.float32) + b3_ref[...], 0.0)
    z = z.reshape(TB, N, E)

    # --- centralize_and_normalize_torch:
    #     subtract per-sample centroid (mean over bins), scale into unit sphere
    #     by 1 / max per-point L2 norm.  rsqrt runs on the EUP (free slot).
    z = z - jnp.mean(z, axis=1, keepdims=True)
    sq = jnp.sum(z * z, axis=2, keepdims=True)           # (TB, N, 1)
    max_sq = jnp.max(sq, axis=1, keepdims=True)          # (TB, 1, 1)
    inv = lax.rsqrt(jnp.maximum(max_sq, 1e-12))          # eps only guards all-zero z
    z = z * inv
    sq = sq * (inv * inv)                                # squared norms of normalized z (reuse)
    z_ref[...] = z

    # --- logits = linear_bin_layer(relu(z))
    zl = jnp.maximum(z, 0.0).reshape(TB * N, E)
    logits = jnp.dot(zl, wb_ref[...], preferred_element_type=jnp.float32) + bb_ref[...]
    logits_ref[...] = logits.reshape(TB, N, NBL)

    # --- torch.cdist(z, z, p=2) via batched Gram trick; contraction on axis 2
    #     of both operands avoids materializing z^T.
    g = lax.dot_general(z, z,
                        dimension_numbers=(((2,), (2,)), ((0,), (0,))),
                        preferred_element_type=jnp.float32)   # (TB, N, N)
    d2 = sq + jnp.swapaxes(sq, 1, 2) - 2.0 * g
    d = jnp.sqrt(jnp.maximum(d2, 0.0))
    # Lane-dense store: one (TB, N*N) slab per grid step (N*N is a multiple of 128).
    d_ref[0] = d.reshape(TB, N * N)


def _pick_tb(B, N, target_rows=256):
    """Largest divisor of B with TB*N ~ target_rows; whole batch if it's tiny."""
    if B * N <= target_rows:
        return B
    want = max(1, (target_rows + N - 1) // N)
    tb = 1
    for cand in range(1, min(B, want) + 1):
        if B % cand == 0:
            tb = cand
    return tb


def conf_linear_forward(x, params, *, nb_bins, embedding_size, batch_size,
                        num_bins_logits):
    """Pure-JAX wrapper: reshape + pallas_call; hot path lives in the kernel."""
    w1, b1, w2, b2, w3, b3, wb, bb = params
    N, E, B, NBL = nb_bins, embedding_size, batch_size, num_bins_logits
    x3 = jnp.reshape(x, (B, N, N)).astype(jnp.float32)

    TB = _pick_tb(B, N)
    steps = B // TB

    z, d_flat, logits = pl.pallas_call(
        _conf_linear_kernel,
        out_shape=(
            jax.ShapeDtypeStruct((B, N, E), jnp.float32),
            jax.ShapeDtypeStruct((steps, TB, N * N), jnp.float32),
            jax.ShapeDtypeStruct((B, N, NBL), jnp.float32),
        ),
        grid_spec=pltpu.PrefetchScalarGridSpec(
            num_scalar_prefetch=0,
            grid=(steps,),
            in_specs=[
                pl.BlockSpec((TB, N, N), lambda b: (b, 0, 0)),   # x (TB samples/step)
                pl.BlockSpec((N, 100), lambda b: (0, 0)),        # W1 (in, out)
                pl.BlockSpec((1, 100), lambda b: (0, 0)),        # b1
                pl.BlockSpec((100, 50), lambda b: (0, 0)),       # W2
                pl.BlockSpec((1, 50), lambda b: (0, 0)),         # b2
                pl.BlockSpec((50, E), lambda b: (0, 0)),         # W3
                pl.BlockSpec((1, E), lambda b: (0, 0)),          # b3
                pl.BlockSpec((E, NBL), lambda b: (0, 0)),        # W_bin
                pl.BlockSpec((1, NBL), lambda b: (0, 0)),        # b_bin
            ],
            out_specs=(
                pl.BlockSpec((TB, N, E), lambda b: (b, 0, 0)),       # z
                pl.BlockSpec((1, TB, N * N), lambda b: (b, 0, 0)),   # d (lane-dense)
                pl.BlockSpec((TB, N, NBL), lambda b: (b, 0, 0)),     # logits
            ),
        ),
        compiler_params=pltpu.CompilerParams(
            dimension_semantics=("parallel",)),
    )(x3, w1, b1, w2, b2, w3, b3, wb, bb)

    w = d_flat.reshape(B, N, N)
    return z, w, logits


def init_conf_linear_params(key, nb_bins, embedding_size, num_bins_logits,
                            zero_init=True):
    """PyTorch-style init. Encoder Linears: U(-1/sqrt(fan_in), +1/sqrt(fan_in)).
    linear_bin_layer: zero weight (zero_init) or xavier-normal weight + zero bias.
    Weights are returned as (in_features, out_features)."""
    dims = [(nb_bins, 100), (100, 50), (50, embedding_size)]
    params = []
    for (fan_in, fan_out) in dims:
        key, kw, kb = jax.random.split(key, 3)
        bound = 1.0 / (fan_in ** 0.5)
        W = jax.random.uniform(kw, (fan_in, fan_out), jnp.float32, -bound, bound)
        b = jax.random.uniform(kb, (1, fan_out), jnp.float32, -bound, bound)
        params.extend([W, b])
    key, kw, kb = jax.random.split(key, 3)
    if zero_init:
        bound = 1.0 / (embedding_size ** 0.5)
        Wb = jnp.zeros((embedding_size, num_bins_logits), jnp.float32)
        bb = jax.random.uniform(kb, (1, num_bins_logits), jnp.float32, -bound, bound)
    else:
        std = (2.0 / (embedding_size + num_bins_logits)) ** 0.5
        Wb = std * jax.random.normal(kw, (embedding_size, num_bins_logits), jnp.float32)
        bb = jnp.zeros((1, num_bins_logits), jnp.float32)
    params.extend([Wb, bb])
    return tuple(params)


if __name__ == "__main__":
    batch_size = 2
    nb_bins = 16
    embedding_size = 3
    num_bins_logits = 10

    key = jax.random.PRNGKey(0)
    key, kx = jax.random.split(key)
    # Synthetic "HiC" input, flattened per sample (forward reshapes it anyway).
    x = jax.random.uniform(kx, (batch_size, nb_bins * nb_bins), jnp.float32)

    params = init_conf_linear_params(key, nb_bins, embedding_size, num_bins_logits)

    z, w, logits = conf_linear_forward(
        x, params,
        nb_bins=nb_bins, embedding_size=embedding_size,
        batch_size=batch_size, num_bins_logits=num_bins_logits)
    jax.block_until_ready((z, w, logits))

    assert z.shape == (batch_size, nb_bins, embedding_size)
    assert w.shape == (batch_size, nb_bins, nb_bins)
    assert logits.shape == (batch_size, nb_bins, num_bins_logits)
    print("KERNEL_OK")
</pallas_src>

<mosaic_0001>
module attributes {stable_mosaic.version = 11 : i64} {
  func.func @_conf_linear_kernel(%arg0: i32, %arg1: memref<2x16x16xf32, #tpu.memory_space<vmem>>, %arg2: memref<16x100xf32, #tpu.memory_space<vmem>>, %arg3: memref<1x100xf32, #tpu.memory_space<vmem>>, %arg4: memref<100x50xf32, #tpu.memory_space<vmem>>, %arg5: memref<1x50xf32, #tpu.memory_space<vmem>>, %arg6: memref<50x3xf32, #tpu.memory_space<vmem>>, %arg7: memref<1x3xf32, #tpu.memory_space<vmem>>, %arg8: memref<3x10xf32, #tpu.memory_space<vmem>>, %arg9: memref<1x10xf32, #tpu.memory_space<vmem>>, %arg10: memref<2x16x3xf32, #tpu.memory_space<vmem>>, %arg11: memref<1x2x256xf32, #tpu.memory_space<vmem>>, %arg12: memref<2x16x10xf32, #tpu.memory_space<vmem>>) attributes {dimension_semantics = [#tpu.dimension_semantics<parallel>], iteration_bounds = array<i64: 1>, scalar_prefetch = 0 : i64, scratch_operands = 0 : i64, tpu.core_type = #tpu.core_type<tc>, window_params = [{transform_indices = @transform_0, window_bounds = array<i64: 2, 16, 16>}, {pipeline_mode = #tpu.pipeline_mode<synchronous>, transform_indices = @transform_1, window_bounds = array<i64: 16, 100>}, {pipeline_mode = #tpu.pipeline_mode<synchronous>, transform_indices = @transform_2, window_bounds = array<i64: 1, 100>}, {pipeline_mode = #tpu.pipeline_mode<synchronous>, transform_indices = @transform_3, window_bounds = array<i64: 100, 50>}, {pipeline_mode = #tpu.pipeline_mode<synchronous>, transform_indices = @transform_4, window_bounds = array<i64: 1, 50>}, {pipeline_mode = #tpu.pipeline_mode<synchronous>, transform_indices = @transform_5, window_bounds = array<i64: 50, 3>}, {pipeline_mode = #tpu.pipeline_mode<synchronous>, transform_indices = @transform_6, window_bounds = array<i64: 1, 3>}, {pipeline_mode = #tpu.pipeline_mode<synchronous>, transform_indices = @transform_7, window_bounds = array<i64: 3, 10>}, {pipeline_mode = #tpu.pipeline_mode<synchronous>, transform_indices = @transform_8, window_bounds = array<i64: 1, 10>}, {transform_indices = @transform_9, window_bounds = array<i64: 2, 16, 3>}, {transform_indices = @transform_10, window_bounds = array<i64: 1, 2, 256>}, {transform_indices = @transform_11, window_bounds = array<i64: 2, 16, 10>}]} {
    %c0 = arith.constant 0 : index
    %c0_0 = arith.constant 0 : index
    %c0_1 = arith.constant 0 : index
    %0 = vector.load %arg1[%c0, %c0_0, %c0_1] : memref<2x16x16xf32, #tpu.memory_space<vmem>>, vector<2x16x16xf32>
    %1 = vector.shape_cast %0 : vector<2x16x16xf32> to vector<32x16xf32>
    %c0_2 = arith.constant 0 : index
    %c0_3 = arith.constant 0 : index
    %2 = vector.load %arg2[%c0_2, %c0_3] : memref<16x100xf32, #tpu.memory_space<vmem>>, vector<16x100xf32>
    %cst = arith.constant dense<0.000000e+00> : vector<32x100xf32>
    %3 = tpu.matmul %1, %2, %cst {dimension_numbers = #tpu.dot_dimension_numbers<[1], [0], [0], [1], [0, 0, 1, 1], [], []>} : vector<32x16xf32>, vector<16x100xf32>, vector<32x100xf32> -> vector<32x100xf32>
    %c0_4 = arith.constant 0 : index
    %c0_5 = arith.constant 0 : index
    %4 = vector.load %arg3[%c0_4, %c0_5] : memref<1x100xf32, #tpu.memory_space<vmem>>, vector<1x100xf32>
    %5 = vector.broadcast %4 : vector<1x100xf32> to vector<32x100xf32>
    %6 = arith.addf %3, %5 : vector<32x100xf32>
    %cst_6 = arith.constant 0.000000e+00 : f32
    %7 = vector.broadcast %cst_6 : f32 to vector<32x100xf32>
    %8 = arith.maximumf %6, %7 : vector<32x100xf32>
    %c0_7 = arith.constant 0 : index
    %c0_8 = arith.constant 0 : index
    %9 = vector.load %arg4[%c0_7, %c0_8] : memref<100x50xf32, #tpu.memory_space<vmem>>, vector<100x50xf32>
    %cst_9 = arith.constant dense<0.000000e+00> : vector<32x50xf32>
    %10 = tpu.matmul %8, %9, %cst_9 {dimension_numbers = #tpu.dot_dimension_numbers<[1], [0], [0], [1], [0, 0, 1, 1], [], []>} : vector<32x100xf32>, vector<100x50xf32>, vector<32x50xf32> -> vector<32x50xf32>
    %c0_10 = arith.constant 0 : index
    %c0_11 = arith.constant 0 : index
    %11 = vector.load %arg5[%c0_10, %c0_11] : memref<1x50xf32, #tpu.memory_space<vmem>>, vector<1x50xf32>
    %12 = vector.broadcast %11 : vector<1x50xf32> to vector<32x50xf32>
    %13 = arith.addf %10, %12 : vector<32x50xf32>
    %cst_12 = arith.constant 0.000000e+00 : f32
    %14 = vector.broadcast %cst_12 : f32 to vector<32x50xf32>
    %15 = arith.maximumf %13, %14 : vector<32x50xf32>
    %c0_13 = arith.constant 0 : index
    %c0_14 = arith.constant 0 : index
    %16 = vector.load %arg6[%c0_13, %c0_14] : memref<50x3xf32, #tpu.memory_space<vmem>>, vector<50x3xf32>
    %cst_15 = arith.constant dense<0.000000e+00> : vector<32x3xf32>
    %17 = tpu.matmul %15, %16, %cst_15 {dimension_numbers = #tpu.dot_dimension_numbers<[1], [0], [0], [1], [0, 0, 1, 1], [], []>} : vector<32x50xf32>, vector<50x3xf32>, vector<32x3xf32> -> vector<32x3xf32>
    %c0_16 = arith.constant 0 : index
    %c0_17 = arith.constant 0 : index
    %18 = vector.load %arg7[%c0_16, %c0_17] : memref<1x3xf32, #tpu.memory_space<vmem>>, vector<1x3xf32>
    %19 = vector.broadcast %18 : vector<1x3xf32> to vector<32x3xf32>
    %20 = arith.addf %17, %19 : vector<32x3xf32>
    %cst_18 = arith.constant 0.000000e+00 : f32
    %21 = vector.broadcast %cst_18 : f32 to vector<32x3xf32>
    %22 = arith.maximumf %20, %21 : vector<32x3xf32>
    %23 = vector.shape_cast %22 : vector<32x3xf32> to vector<2x16x3xf32>
    %cst_19 = arith.constant dense<0.000000e+00> : vector<2x3xf32>
    %24 = vector.multi_reduction <add>, %23, %cst_19 [1] : vector<2x16x3xf32> to vector<2x3xf32>
    %25 = vector.shape_cast %24 : vector<2x3xf32> to vector<2x1x3xf32>
    %cst_20 = arith.constant 1.600000e+01 : f32
    %26 = vector.broadcast %cst_20 : f32 to vector<2x1x3xf32>
    %27 = arith.divf %25, %26 : vector<2x1x3xf32>
    %28 = vector.broadcast %27 : vector<2x1x3xf32> to vector<2x16x3xf32>
    %29 = arith.subf %23, %28 : vector<2x16x3xf32>
    %30 = arith.mulf %29, %29 : vector<2x16x3xf32>
    %cst_21 = arith.constant dense<0.000000e+00> : vector<2x16xf32>
    %31 = vector.multi_reduction <add>, %30, %cst_21 [2] : vector<2x16x3xf32> to vector<2x16xf32>
    %32 = vector.shape_cast %31 : vector<2x16xf32> to vector<2x16x1xf32>
    %cst_22 = arith.constant dense<0xFF800000> : vector<2x1xf32>
    %33 = vector.multi_reduction <maximumf>, %32, %cst_22 [1] : vector<2x16x1xf32> to vector<2x1xf32>
    %34 = vector.shape_cast %33 : vector<2x1xf32> to vector<2x1x1xf32>
    %cst_23 = arith.constant 9.99999996E-13 : f32
    %35 = vector.broadcast %cst_23 : f32 to vector<2x1x1xf32>
    %36 = arith.maximumf %34, %35 : vector<2x1x1xf32>
    %37 = math.rsqrt %36 : vector<2x1x1xf32>
    %38 = vector.broadcast %37 : vector<2x1x1xf32> to vector<2x16x3xf32>
    %39 = arith.mulf %29, %38 : vector<2x16x3xf32>
    %40 = arith.mulf %37, %37 : vector<2x1x1xf32>
    %41 = vector.broadcast %40 : vector<2x1x1xf32> to vector<2x16x1xf32>
    %42 = arith.mulf %32, %41 : vector<2x16x1xf32>
    %c0_24 = arith.constant 0 : index
    %c0_25 = arith.constant 0 : index
    %c0_26 = arith.constant 0 : index
    %43 = vector.load %arg10[%c0_24, %c0_25, %c0_26] : memref<2x16x3xf32, #tpu.memory_space<vmem>>, vector<2x16x3xf32>
    tpu.vector_store %arg10[%c0_24, %c0_25, %c0_26], %39 {strides = array<i32>} : memref<2x16x3xf32, #tpu.memory_space<vmem>>, vector<2x16x3xf32>,
    %cst_27 = arith.constant 0.000000e+00 : f32
    %44 = vector.broadcast %cst_27 : f32 to vector<2x16x3xf32>
    %45 = arith.maximumf %39, %44 : vector<2x16x3xf32>
    %46 = vector.shape_cast %45 : vector<2x16x3xf32> to vector<32x3xf32>
    %c0_28 = arith.constant 0 : index
    %c0_29 = arith.constant 0 : index
    %47 = vector.load %arg8[%c0_28, %c0_29] : memref<3x10xf32, #tpu.memory_space<vmem>>, vector<3x10xf32>
    %cst_30 = arith.constant dense<0.000000e+00> : vector<32x10xf32>
    %48 = tpu.matmul %46, %47, %cst_30 {dimension_numbers = #tpu.dot_dimension_numbers<[1], [0], [0], [1], [0, 0, 1, 1], [], []>} : vector<32x3xf32>, vector<3x10xf32>, vector<32x10xf32> -> vector<32x10xf32>
    %c0_31 = arith.constant 0 : index
    %c0_32 = arith.constant 0 : index
    %49 = vector.load %arg9[%c0_31, %c0_32] : memref<1x10xf32, #tpu.memory_space<vmem>>, vector<1x10xf32>
    %50 = vector.broadcast %49 : vector<1x10xf32> to vector<32x10xf32>
    %51 = arith.addf %48, %50 : vector<32x10xf32>
    %52 = vector.shape_cast %51 : vector<32x10xf32> to vector<2x16x10xf32>
    %c0_33 = arith.constant 0 : index
    %c0_34 = arith.constant 0 : index
    %c0_35 = arith.constant 0 : index
    %53 = vector.load %arg12[%c0_33, %c0_34, %c0_35] : memref<2x16x10xf32, #tpu.memory_space<vmem>>, vector<2x16x10xf32>
    tpu.vector_store %arg12[%c0_33, %c0_34, %c0_35], %52 {strides = array<i32>} : memref<2x16x10xf32, #tpu.memory_space<vmem>>, vector<2x16x10xf32>,
    %cst_36 = arith.constant dense<0.000000e+00> : vector<2x16x16xf32>
    %54 = tpu.matmul %39, %39, %cst_36 {dimension_numbers = #tpu.dot_dimension_numbers<[2], [2], [1], [1], [0, 0, 0, 1, 1, 1], [0], [0]>} : vector<2x16x3xf32>, vector<2x16x3xf32>, vector<2x16x16xf32> -> vector<2x16x16xf32>
    %55 = tpu.transpose %42, [0, 2, 1] : vector<2x16x1xf32> -> vector<2x1x16xf32>
    %56 = vector.broadcast %42 : vector<2x16x1xf32> to vector<2x16x16xf32>
    %57 = vector.broadcast %55 : vector<2x1x16xf32> to vector<2x16x16xf32>
    %58 = arith.addf %56, %57 : vector<2x16x16xf32>
    %cst_37 = arith.constant 2.000000e+00 : f32
    %59 = vector.broadcast %cst_37 : f32 to vector<2x16x16xf32>
    %60 = arith.mulf %59, %54 : vector<2x16x16xf32>
    %61 = arith.subf %58, %60 : vector<2x16x16xf32>
    %cst_38 = arith.constant 0.000000e+00 : f32
    %62 = vector.broadcast %cst_38 : f32 to vector<2x16x16xf32>
    %63 = arith.maximumf %61, %62 : vector<2x16x16xf32>
    %64 = math.sqrt %63 : vector<2x16x16xf32>
    %65 = vector.shape_cast %64 : vector<2x16x16xf32> to vector<2x256xf32>
    %c0_39 = arith.constant 0 : index
    %c0_40 = arith.constant 0 : index
    %c0_41 = arith.constant 0 : index
    %66 = vector.load %arg11[%c0_39, %c0_40, %c0_41] : memref<1x2x256xf32, #tpu.memory_space<vmem>>, vector<1x2x256xf32>
    %67 = vector.shape_cast %66 : vector<1x2x256xf32> to vector<2x256xf32>
    %68 = vector.shape_cast %65 : vector<2x256xf32> to vector<1x2x256xf32>
    tpu.vector_store %arg11[%c0_39, %c0_40, %c0_41], %68 {strides = array<i32>} : memref<1x2x256xf32, #tpu.memory_space<vmem>>, vector<1x2x256xf32>,
    return
  }
  func.func @transform_0(%arg0: i32) -> (i32, i32, i32) {
    %c0_i32 = arith.constant 0 : i32
    %c0_i32_0 = arith.constant 0 : i32
    %c0_i32_1 = arith.constant 0 : i32
    return %arg0, %c0_i32, %c0_i32_0 : i32, i32, i32
  }
  func.func @transform_1(%arg0: i32) -> (i32, i32) {
    %c0_i32 = arith.constant 0 : i32
    %c0_i32_0 = arith.constant 0 : i32
    %c0_i32_1 = arith.constant 0 : i32
    return %c0_i32, %c0_i32_0 : i32, i32
  }
  func.func @transform_2(%arg0: i32) -> (i32, i32) {
    %c0_i32 = arith.constant 0 : i32
    %c0_i32_0 = arith.constant 0 : i32
    %c0_i32_1 = arith.constant 0 : i32
    return %c0_i32, %c0_i32_0 : i32, i32
  }
  func.func @transform_3(%arg0: i32) -> (i32, i32) {
    %c0_i32 = arith.constant 0 : i32
    %c0_i32_0 = arith.constant 0 : i32
    %c0_i32_1 = arith.constant 0 : i32
    return %c0_i32, %c0_i32_0 : i32, i32
  }
  func.func @transform_4(%arg0: i32) -> (i32, i32) {
    %c0_i32 = arith.constant 0 : i32
    %c0_i32_0 = arith.constant 0 : i32
    %c0_i32_1 = arith.constant 0 : i32
    return %c0_i32, %c0_i32_0 : i32, i32
  }
  func.func @transform_5(%arg0: i32) -> (i32, i32) {
    %c0_i32 = arith.constant 0 : i32
    %c0_i32_0 = arith.constant 0 : i32
    %c0_i32_1 = arith.constant 0 : i32
    return %c0_i32, %c0_i32_0 : i32, i32
  }
  func.func @transform_6(%arg0: i32) -> (i32, i32) {
    %c0_i32 = arith.constant 0 : i32
    %c0_i32_0 = arith.constant 0 : i32
    %c0_i32_1 = arith.constant 0 : i32
    return %c0_i32, %c0_i32_0 : i32, i32
  }
  func.func @transform_7(%arg0: i32) -> (i32, i32) {
    %c0_i32 = arith.constant 0 : i32
    %c0_i32_0 = arith.constant 0 : i32
    %c0_i32_1 = arith.constant 0 : i32
    return %c0_i32, %c0_i32_0 : i32, i32
  }
  func.func @transform_8(%arg0: i32) -> (i32, i32) {
    %c0_i32 = arith.constant 0 : i32
    %c0_i32_0 = arith.constant 0 : i32
    %c0_i32_1 = arith.constant 0 : i32
    return %c0_i32, %c0_i32_0 : i32, i32
  }
  func.func @transform_9(%arg0: i32) -> (i32, i32, i32) {
    %c0_i32 = arith.constant 0 : i32
    %c0_i32_0 = arith.constant 0 : i32
    %c0_i32_1 = arith.constant 0 : i32
    return %arg0, %c0_i32, %c0_i32_0 : i32, i32, i32
  }
  func.func @transform_10(%arg0: i32) -> (i32, i32, i32) {
    %c0_i32 = arith.constant 0 : i32
    %c0_i32_0 = arith.constant 0 : i32
    %c0_i32_1 = arith.constant 0 : i32
    return %arg0, %c0_i32, %c0_i32_0 : i32, i32, i32
  }
  func.func @transform_11(%arg0: i32) -> (i32, i32, i32) {
    %c0_i32 = arith.constant 0 : i32
    %c0_i32_0 = arith.constant 0 : i32
    %c0_i32_1 = arith.constant 0 : i32
    return %arg0, %c0_i32, %c0_i32_0 : i32, i32, i32
  }
}

</mosaic_0001>

<bundles_post_ra>
// kernel: tpu_custom_call.1
= control target key start
LH: loop header
LB: loop body
LE: loop exit
PB: predicated region body
PF: predicated region fallthrough
CT: control target
= control target key end

     0   :  { %vm49_vm0 = vcmask 130048   ;;  %vm184_vm1 = vcmask 1043456   ;;  %s1556_s0 = inlined_call_operand.vmem [shape: f32[2,16,16], index: 0, kind: input, shape index: {}]   ;;  %s1557_s1 = inlined_call_operand.vmem [shape: f32[16,100], index: 1, kind: input, shape index: {}]   ;;  %s1558_s2 = inlined_call_operand.vmem [shape: f32[1,100], index: 2, kind: input, shape index: {}]   ;;  %s1559_s3 = inlined_call_operand.vmem [shape: f32[100,50], index: 3, kind: input, shape index: {}]   ;;  %s1560_s4 = inlined_call_operand.vmem [shape: f32[1,50], index: 4, kind: input, shape index: {}]   ;;  %s1561_s5 = inlined_call_operand.vmem [shape: f32[50,3], index: 5, kind: input, shape index: {}]   ;;  %s1562_s6 = inlined_call_operand.vmem [shape: f32[1,3], index: 6, kind: input, shape index: {}]   ;;  %s1563_s7 = inlined_call_operand.vmem [shape: f32[3,10], index: 7, kind: input, shape index: {}]   ;;  %s1564_s8 = inlined_call_operand.vmem [shape: f32[1,10], index: 8, kind: input, shape index: {}]   ;;  %s1565_s9 = inlined_call_operand.vmem [shape: f32[2,16,3], index: 9, kind: output, shape index: {0}]   ;;  %s1566_s10 = inlined_call_operand.hbm [shape: f32[1,2,256], index: 10, kind: output, shape index: {1}]   ;;  %s1567_s11 = inlined_call_operand.vmem [shape: f32[2,16,10], index: 11, kind: output, shape index: {2}]  }
   0x1   :  { %v41_v0 = vld [vmem:[%s1557_s1 + $0x8] sm:$0xff]  ;;  %v40_v1 = vld [vmem:[%s1557_s1] sm:$0xff]  ;;  %v162_v5 = vld [vmem:[%s1559_s3 + $0x58] sm:$0xff] }
   0x2   :  { %v36_v2 = vld [vmem:[%s1556_s0] sm:$0xff]  ;;  %1188 = vmatprep.subr.mxu0 %v41_v0  ;;  %v37_v3 = vld [vmem:[%s1556_s0 + $0x8] sm:$0xff]  ;;  %v38_v6 = vld [vmem:[%s1556_s0 + $0x10] sm:$0xff] }
   0x3   :  { %1192 = vmatprep.mubr.msk.f32.mxu0 %vm49_vm0, %v36_v2  ;;  %1189 = vmatpush3.msra.mxu0 %v41_v0  ;;  %v163_v4 = vld [vmem:[%s1559_s3 + $0x60] sm:$0xf]  ;;  %v161_v7 = vld [vmem:[%s1559_s3 + $0x50] sm:$0xff] }
   0x4   :  { %1190 = vmatprep.subr.mxu0 %v40_v1  ;;  %1198 = vmatprep.subr.msk.mxu1 %vm184_vm1, %v163_v4 }
   0x5   :  { %1191 = vmatpush3.msra.mxu0 %v40_v1  ;;  %1199 = vmatpush3.msk.msra.mxu1 %vm184_vm1, %v163_v4 }
   0x6   :  { %1193 = vmatmul.mubr.msk.f32.vlgmr.msra.gmra.mxu0 %vm49_vm0, %v37_v3  ;;  %1200 = vmatprep.subr.mxu1 %v162_v5 }
   0x7   :  { %17 = vsyncpa [#allocation3], 0  ;;  %1195 = vmatprep.mubr.msk.f32.mxu0 %vm49_vm0, %v38_v6  ;;  %v39_v8 = vld [vmem:[%s1556_s0 + $0x18] sm:$0xff]  ;;  %1201 = vmatpush3.msra.mxu1 %v162_v5  ;;  %v160_v9 = vld [vmem:[%s1559_s3 + $0x48] sm:$0xff]  ;;  %vm304_vm2 = vcmask 1041408   ;;  %vm171_vm3 = vcmask 818176  }
   0x8   :  { %1202 = vmatprep.subr.mxu1 %v161_v7  ;;  %v159_v10 = vld [vmem:[%s1559_s3 + $0x40] sm:$0xff]  ;;  %v158_v11 = vld [vmem:[%s1559_s3 + $0x38] sm:$0xff]  ;;  %v157_v12 = vld [vmem:[%s1559_s3 + $0x30] sm:$0xff]  ;;  %vm291_vm4 = vcmask 408576   ;;  %vm397_vm5 = vcmask 23552   ;;  %vm495_vm6 = vcmask 1042432  }
   0x9   :  { %1203 = vmatpush3.msra.mxu1 %v161_v7  ;;  %v156_v13 = vld [vmem:[%s1559_s3 + $0x28] sm:$0xff]  ;;  %v155_v14 = vld [vmem:[%s1559_s3 + $0x20] sm:$0xff]  ;;  %v154_v15 = vld [vmem:[%s1559_s3 + $0x18] sm:$0xff]  ;;  %vm584_vm7 = vcmask 80896   ;;  %s1321_s22 = smov 16   ;;  %s1322_s23 = smov 48  }
   0xa   :  { %1196 = vmatmul.mubr.msk.f32.gmra.mxu0 %vm49_vm0, %v39_v8  ;;  %1204 = vmatprep.subr.mxu1 %v160_v9  ;;  %v153_v16 = vld [vmem:[%s1559_s3 + $0x10] sm:$0xff]  ;;  %v152_v17 = vld [vmem:[%s1559_s3 + $0x8] sm:$0xff]  ;;  %v151_v18 = vld [vmem:[%s1559_s3] sm:$0xff]  ;;  %s1323_s24 = smov 64   ;;  %s1324_s25 = smov 96   ;;  %vm1056_vm1 = vcmask 261120  }
   0xb   :  { %1205 = vmatpush3.msra.mxu1 %v160_v9  ;;  %v283_v19 = vld [vmem:[%s1561_s5 + $0x30] sm:$0x3]  ;;  %v282_v20 = vld [vmem:[%s1561_s5 + $0x28] sm:$0xff]  ;;  %v281_v21 = vld [vmem:[%s1561_s5 + $0x20] sm:$0xff]  ;;  %s1325_s26 = smov 80   ;;  %s1326_s27 = smov 112  }
   0xc   :  { %1206 = vmatprep.subr.mxu1 %v159_v10  ;;  %1230 = vmatprep.subr.msk.mxu0 %vm304_vm2, %v283_v19  ;;  %v1109_v22 = vld [vmem:[%s1558_s2] ss:$0 sm:$0xff]  ;;  %v280_v35 = vld [vmem:[%s1561_s5 + $0x18] sm:$0xff]  ;;  %v279_v36 = vld [vmem:[%s1561_s5 + $0x10] sm:$0xff]  ;;  %s1327_s1 = smov [#allocation2]  }
   0xd   :  { %1207 = vmatpush3.msra.mxu1 %v159_v10  ;;  %1231 = vmatpush3.msk.msra.mxu0 %vm304_vm2, %v283_v19  ;;  %v278_v37 = vld [vmem:[%s1561_s5 + $0x8] sm:$0xff]  ;;  %v277_v38 = vld [vmem:[%s1561_s5] sm:$0xff]  ;;  %vm1058_vm2 = vcmask 392192   ;;  %s1095_s5 = sshll.u32 %s1327_s1, 4  ;;  %s1096_s5 = int_to_ptr.vmem [resolvable:$true] %s1095_s5 }
   0xe   :  { %1208 = vmatprep.subr.mxu1 %v158_v11  ;;  %1232 = vmatprep.subr.mxu0 %v282_v20  ;;  %v1114_v39 = vld [vmem:[%s1560_s4] ss:$0 sm:$0xff]  ;;  %s1295_s28 = scalar_lea.vmem %s1096_s5, 64  ;;  %p1300_p1 = scmp.lt.s32.totalorder %s1096_s5, %s1096_s5 }
   0xf   :  { %1209 = vmatpush3.msra.mxu1 %v158_v11  ;;  %1233 = vmatpush3.msra.mxu0 %v282_v20  ;;  %v1120_v52 = vld [vmem:[%s1562_s6] ss:$0 sm:$0xff]  ;;  %p1296_p0 = scmp.ne.s32.totalorder %s1096_s5, %s1295_s28  ;;  %p1301_p2 = scmp.lt.s32.totalorder %s1295_s28, %s1295_s28 }
  0x10   :  { %1210 = vmatprep.subr.mxu1 %v157_v12  ;;  %1234 = vmatprep.subr.mxu0 %v281_v21 }
  0x11   :  { %1211 = vmatpush3.msra.mxu1 %v157_v12  ;;  %1235 = vmatpush3.msra.mxu0 %v281_v21  ;;  %p1302_p3 = por %p1301_p2, %p1300_p1 }
  0x12   :  { %1212 = vmatprep.subr.mxu1 %v156_v13  ;;  %1236 = vmatprep.subr.mxu0 %v280_v35 }
  0x13   :  { %1213 = vmatpush3.msra.mxu1 %v156_v13  ;;  %1237 = vmatpush3.msra.mxu0 %v280_v35  ;;  %p1303_p4 = pnand %p1302_p3, %p1296_p0 }
  0x14   :  { %1214 = vmatprep.subr.mxu1 %v155_v14  ;;  %1238 = vmatprep.subr.mxu0 %v279_v36 }
  0x15   :  { %1215 = vmatpush3.msra.mxu1 %v155_v14  ;;  %1239 = vmatpush3.msra.mxu0 %v279_v36 }
  0x16   :  { %1216 = vmatprep.subr.mxu1 %v154_v15  ;;  %1240 = vmatprep.subr.mxu0 %v278_v37 }
  0x17   :  { %1217 = vmatpush3.msra.mxu1 %v154_v15  ;;  %1241 = vmatpush3.msra.mxu0 %v278_v37 }
  0x18   :  { %1218 = vmatprep.subr.mxu1 %v153_v16  ;;  %1242 = vmatprep.subr.mxu0 %v277_v38 }
  0x19   :  { %1219 = vmatpush3.msra.mxu1 %v153_v16  ;;  %1243 = vmatpush3.msra.mxu0 %v277_v38 }
  0x1a   :  { %1220 = vmatprep.subr.mxu1 %v152_v17 }
  0x1b   :  { %1221 = vmatpush3.msra.mxu1 %v152_v17 }
  0x1c   :  { %1222 = vmatprep.subr.mxu1 %v151_v18 }
  0x1d   :  { %1223 = vmatpush3.msra.mxu1 %v151_v18 }
  0xc6   :  { %v1194_v23 = vpop.f32.mrf.mxu0 }
  0xc7   :  { %v134_v24 = vadd.f32 %v1194_v23, %v1109_v22 }
  0xc8   :  { %v128_v25 = vpop.f32.mrf.mxu0 }
  0xc9   :  { %v129_v26 = vadd.f32 %v1109_v22, %v128_v25  ;;  %v148_v29 = vmax.f32 %v134_v24, 0.0 }
  0xca   :  { %v1197_v27 = vpop.f32.mrf.mxu0 }
  0xcb   :  { %v147_v28 = vmax.f32 %v129_v26, 0.0  ;;  %v144_v30 = vadd.f32 %v1197_v27, %v1109_v22 }
  0xcc   :  { %v138_v31 = vpop.f32.mrf.mxu0 }
  0xcd   :  { %v139_v32 = vadd.f32 %v1109_v22, %v138_v31  ;;  %1224 = vmatprep.mubr.msk.f32.mxu1 %vm171_vm3, %v147_v28  ;;  %v150_v34 = vmax.f32 %v144_v30, 0.0 }
  0xce   :  { %1225 = vmatmul.mubr.msk.f32.vlgmr.msra.gmra.mxu1 %vm171_vm3, %v148_v29 }
  0xcf   :  { %v149_v33 = vmax.f32 %v139_v32, 0.0 }
  0xd1   :  { %1227 = vmatprep.mubr.msk.f32.mxu1 %vm171_vm3, %v149_v33  ;;  %v475_v33 = vld [vmem:[%s1563_s7] sm:$0x7] }
  0xd2   :  { %1228 = vmatmul.mubr.msk.f32.gmra.mxu1 %vm171_vm3, %v150_v34  ;;  %1250 = vmatprep.subr.msk.mxu0 %vm495_vm6, %v475_v33  ;;  %vm1060_vm3 = vcmask 523264  }
 0x18e   :  { %v1226_v40 = vpop.f32.mrf.mxu1 }
 0x18f   :  { %v260_v41 = vadd.f32 %v1226_v40, %v1114_v39 }
 0x190   :  { %v254_v42 = vpop.f32.mrf.mxu1 }
 0x191   :  { %v255_v43 = vadd.f32 %v1114_v39, %v254_v42  ;;  %v274_v46 = vmax.f32 %v260_v41, 0.0 }
 0x192   :  { %v1229_v44 = vpop.f32.mrf.mxu1 }
 0x193   :  { %v273_v45 = vmax.f32 %v255_v43, 0.0  ;;  %v270_v47 = vadd.f32 %v1229_v44, %v1114_v39 }
 0x194   :  { %v264_v48 = vpop.f32.mrf.mxu1 }
 0x195   :  { %v265_v49 = vadd.f32 %v1114_v39, %v264_v48  ;;  %1244 = vmatprep.mubr.msk.f32.mxu0 %vm291_vm4, %v273_v45  ;;  %v276_v51 = vmax.f32 %v270_v47, 0.0 }
 0x196   :  { %1245 = vmatmul.mubr.msk.f32.vlgmr.msra.gmra.mxu0 %vm291_vm4, %v274_v46 }
 0x197   :  { %v275_v50 = vmax.f32 %v265_v49, 0.0  ;;  %1251 = vmatpush3.msk.msra.mxu0 %vm495_vm6, %v475_v33  ;;  %vm1066_vm6 = vcmask 916480  }
 0x199   :  { %1247 = vmatprep.mubr.msk.f32.mxu0 %vm291_vm4, %v275_v50 }
 0x19a   :  { %1248 = vmatmul.mubr.msk.f32.gmra.mxu0 %vm291_vm4, %v276_v51  ;;  %vm1062_vm4 = vcmask 654336  }
 0x256   :  { %v1246_v53 = vpop.f32.mrf.mxu0 }
 0x257   :  { %v380_v54 = vadd.f32 %v1246_v53, %v1120_v52 }
 0x258   :  { %v374_v55 = vpop.f32.mrf.mxu0 }
 0x259   :  { %v394_v56 = vmax.f32 %v380_v54, 0.0  ;;  %v375_v57 = vadd.f32 %v1120_v52, %v374_v55 }
 0x25a   :  { %v1249_v58 = vpop.f32.mrf.mxu0 }
 0x25b   :  { %v393_v59 = vmax.f32 %v375_v57, 0.0  ;;  %v390_v60 = vadd.f32 %v1249_v58, %v1120_v52  ;;  %v399_v62 = vsel %vm397_vm5, %v394_v56, 0.0 }
 0x25c   :  { %v384_v61 = vpop.f32.mrf.mxu0 }
 0x25d   :  { %v398_v63 = vsel %vm397_vm5, %v393_v59, 0.0  ;;  %v396_v0 = vmax.f32 %v390_v60, 0.0  ;;  %v385_v1 = vadd.f32 %v1120_v52, %v384_v61 }
 0x25e   :  { %v400_v2 = vadd.f32 %v399_v62, %v398_v63 }
 0x25f   :  { %v395_v3 = vmax.f32 %v385_v1, 0.0  ;;  %v408_v5 = vsel %vm397_vm5, %v396_v0, 0.0 }
 0x260   :  { %v401_v4 = vrot.slane %v400_v2, 4 }
 0x261   :  { %v407_v6 = vsel %vm397_vm5, %v395_v3, 0.0 }
 0x262   :  { %v402_v7 = vadd.f32 %v401_v4, %v400_v2  ;;  %v409_v8 = vadd.f32 %v408_v5, %v407_v6  ;;  %v815_v6 = vlaneseq }
 0x264   :  { %v403_v9 = vrot.slane %v402_v7, 2  ;;  %v410_v10 = vrot.slane %v409_v8, 4 }
 0x266   :  { %v404_v11 = vadd.f32 %v403_v9, %v402_v7  ;;  %v411_v12 = vadd.f32 %v410_v10, %v409_v8  ;;  %v1126_v7 = vld [vmem:[%s1564_s8] ss:$0 sm:$0xff]  ;;  %v816_v8 = vshrl.u32 %v815_v6, 7 }
 0x268   :  { %v405_v13 = vrot.slane %v404_v11, 1  ;;  %v412_v14 = vrot.slane %v411_v12, 2 }
 0x26a   :  { %v406_v15 = vadd.f32 %v405_v13, %v404_v11  ;;  %v413_v16 = vadd.f32 %v412_v14, %v411_v12  ;;  %v817_v12 = vsub.s32 0, %v816_v8 }
 0x26c   :  { %v417_v17 = vmul.f32 0.0625, %v406_v15  ;;  %v414_v18 = vrot.slane %v413_v16, 1 }
 0x26e   :  { %v419_v19 = vsub.f32 %v393_v59, %v417_v17  ;;  %v415_v20 = vadd.f32 %v414_v18, %v413_v16  ;;  %v420_v21 = vsub.f32 %v394_v56, %v417_v17 }
 0x270   :  { %v418_v22 = vmul.f32 0.0625, %v415_v20  ;;  %v423_v23 = vmul.f32 %v419_v19, %v419_v19  ;;  %v424_v26 = vmul.f32 %v420_v21, %v420_v21 }
 0x272   :  { %v421_v24 = vsub.f32 %v395_v3, %v418_v22  ;;  %v427_v25 = vsel %vm397_vm5, %v423_v23, 0.0  ;;  %v422_v27 = vsub.f32 %v396_v0, %v418_v22  ;;  %v430_v30 = vsel %vm397_vm5, %v424_v26, 0.0 }
 0x273   :  { %428 = vadd.xlane.f32.xlu0 %v427_v25 }
 0x274   :  { %v425_v28 = vmul.f32 %v421_v24, %v421_v24  ;;  %v426_v31 = vmul.f32 %v422_v27, %v422_v27 }
 0x276   :  { %v433_v29 = vsel %vm397_vm5, %v425_v28, 0.0  ;;  %v436_v32 = vsel %vm397_vm5, %v426_v31, 0.0 }
 0x277   :  { %434 = vadd.xlane.f32.xlu1 %v433_v29  ;;  %431 = vadd.xlane.f32.xlu0 %v430_v30 }
 0x27b   :  { %437 = vadd.xlane.f32.xlu1 %v436_v32 }
 0x2fc   :  { %v429_v34 = vpop.xlane.xlu0 %428 }
 0x300   :  { %v435_v35 = vpop.xlane.xlu1 %434  ;;  %v432_v36 = vpop.xlane.xlu0 %431 }
 0x301   :  { %v439_v37 = vmax.f32 %v429_v34, %v432_v36 }
 0x303   :  { %v440_v38 = vrot.slane %v439_v37, 4 }
 0x304   :  { %v438_v39 = vpop.xlane.xlu1 %437 }
 0x305   :  { %v441_v40 = vmax.f32 %v439_v37, %v440_v38  ;;  %v446_v41 = vmax.f32 %v435_v35, %v438_v39 }
 0x307   :  { %v442_v42 = vrot.slane %v441_v40, 2  ;;  %v447_v43 = vrot.slane %v446_v41, 4 }
 0x309   :  { %v443_v44 = vmax.f32 %v441_v40, %v442_v42  ;;  %v448_v45 = vmax.f32 %v446_v41, %v447_v43  ;;  %v1317_v42 = vmov 1983009808  }
 0x30a   :  { %v869_v43 = vunpack.c.l.s4 %v1317_v42 }
 0x30b   :  { %v444_v46 = vrot.slane %v443_v44, 1  ;;  %v449_v47 = vrot.slane %v448_v45, 2 }
 0x30d   :  { %v445_v48 = vmax.f32 %v443_v44, %v444_v46  ;;  %v450_v49 = vmax.f32 %v448_v45, %v449_v47  ;;  %v1318_v44 = vmov 1934713408   ;;  %v870_v46 = vunpack.c.0.s8 %v869_v43 }
 0x30e   :  { %v900_v45 = vunpack.c.l.s4 %v1318_v44 }
 0x30f   :  { %v453_v50 = vmax.f32 %v445_v48, 1e-12  ;;  %v451_v51 = vrot.slane %v450_v49, 1 }
 0x310   :  { %v901_v47 = vunpack.c.0.s8 %v900_v45 }
 0x311   :  { %1283 = vrsqrt.f32 %v453_v50  ;;  %v452_v52 = vmax.f32 %v450_v49, %v451_v51  ;;  %v873_v49 = vsub.s32 %v870_v46, %v816_v8 }
 0x312   :  { %v1541_v50 = vsub.s32 %v901_v47, %v816_v8 }
 0x313   :  { %v454_v53 = vmax.f32 %v452_v52, 1e-12 }
 0x315   :  { %1285 = vrsqrt.f32 %v454_v53 }
 0x31e   :  { %v1284_v54 = vpop.eup %1283 }
 0x31f   :  { %v461_v55 = vmul.f32 %v1284_v54, %v1284_v54  ;;  %v458_v56 = vmul.f32 %v1284_v54, %v420_v21  ;;  %v457_v57 = vmul.f32 %v1284_v54, %v419_v19 }
 0x321   :  { %468 = vst.msk [vmem:[%s1565_s9 + $0x8] sm:$0xff] %vm397_vm5, %v458_v56  ;;  %1258 = vmatprep.subr.msk.mxu0 %vm397_vm5, %v458_v56  ;;  %v463_v58 = vmul.f32 %v461_v55, %v429_v34  ;;  %467 = vst.msk [vmem:[%s1565_s9] sm:$0xff] %vm397_vm5, %v457_v57  ;;  %v471_v59 = vmax.f32 %v457_v57, 0.0  ;;  %v472_v60 = vmax.f32 %v458_v56, 0.0  ;;  %v464_v3 = vmul.f32 %v461_v55, %v432_v36 }
 0x322   :  { %v1286_v61 = vpop.eup %1285 }
 0x323   :  { %v462_v62 = vmul.f32 %v1286_v61, %v1286_v61  ;;  %751 = vxpose.xlu0.b32.start [1/2] (short) (narrow) %v463_v58, 8  ;;  %1252 = vmatprep.mubr.msk.f32.mxu0 %vm397_vm5, %v471_v59  ;;  %v460_v63 = vmul.f32 %v1286_v61, %v422_v27  ;;  %v459_v0 = vmul.f32 %v1286_v61, %v421_v24 }
 0x324   :  { %1253 = vmatmul.mubr.msk.f32.vlgmr.msra.gmra.mxu0 %vm397_vm5, %v472_v60 }
 0x325   :  { %1259 = vmatpush3.xpose.msk.msra.mxu0 %vm397_vm5, %v458_v56  ;;  %470 = vst.msk [vmem:[%s1565_s9 + $0x18] sm:$0xff] %vm397_vm5, %v460_v63  ;;  %1265 = vmatprep.subr.msk.mxu1 %vm397_vm5, %v460_v63  ;;  %469 = vst.msk [vmem:[%s1565_s9 + $0x10] sm:$0xff] %vm397_vm5, %v459_v0  ;;  %v465_v1 = vmul.f32 %v462_v62, %v435_v35  ;;  %v473_v2 = vmax.f32 %v459_v0, 0.0  ;;  %v474_v4 = vmax.f32 %v460_v63, 0.0 }
 0x326   :  { %1260 = vmatprep.subr.msk.mxu0 %vm397_vm5, %v457_v57  ;;  %1269 = vmatprep.mubr.msk.f32.mxu1 %vm397_vm5, %v459_v0  ;;  %v466_v5 = vmul.f32 %v462_v62, %v438_v39 }
 0x327   :  { %1266 = vmatpush3.xpose.msk.msra.mxu1 %vm397_vm5, %v460_v63  ;;  %783 = vxpose.xlu1.b32.start [1/2] (short) (narrow) %v465_v1, 8 }
 0x328   :  { %1267 = vmatprep.subr.msk.mxu1 %vm397_vm5, %v459_v0  ;;  %752 = vxpose.xlu0.b32.end [2/2] (short) (narrow) %v464_v3, 8 }
 0x329   :  { %1255 = vmatprep.mubr.msk.f32.mxu0 %vm397_vm5, %v473_v2  ;;  %1261 = vmatpush3.xpose.msk.msra.mxu0 %vm397_vm5, %v457_v57 }
 0x32a   :  { %1256 = vmatmul.mubr.msk.f32.gmra.mxu0 %vm397_vm5, %v474_v4 }
 0x32b   :  { %1262 = vmatprep.mubr.msk.f32.mxu0 %vm397_vm5, %v457_v57  ;;  %1268 = vmatpush3.xpose.msk.msra.mxu1 %vm397_vm5, %v459_v0 }
 0x32c   :  { %784 = vxpose.xlu1.b32.end [2/2] (short) (narrow) %v466_v5, 8 }
 0x32e   :  { %1263 = vmatmul.mubr.msk.f32.vlgmr.msra.gmra.mxu0 %vm397_vm5, %v458_v56  ;;  %1270 = vmatmul.mubr.msk.f32.vlgmr.msra.gmra.mxu1 %vm397_vm5, %v460_v63  ;;  %vm1064_vm5 = vcmask 785408  }
 0x3a0   :  { %v767_v14 = vpop.trf.xlu0 }
 0x3a1   :  { %v818_v17 = vrot.slane %v767_v14, %v817_v12 }
 0x3a3   :  { %v824_v24 = vadd.f32 %v818_v17, %v464_v3  ;;  %v823_v28 = vadd.f32 %v818_v17, %v463_v58 }
 0x3a4   :  { %v799_v15 = vpop.trf.xlu1 }
 0x3a5   :  { %v822_v18 = vrot.slane %v799_v15, %v817_v12  ;;  %v1319_v12 = vmov 0.0  }
 0x3a7   :  { %v826_v25 = vadd.f32 %v822_v18, %v466_v5  ;;  %v825_v29 = vadd.f32 %v822_v18, %v465_v1 }
 0x3e4   :  { %v1254_v9 = vpop.f32.mrf.mxu0 }
 0x3e5   :  { %v571_v10 = vadd.f32 %v1254_v9, %v1126_v7 }
 0x3e6   :  { %v565_v11 = vpop.f32.mrf.mxu0 }
 0x3e7   :  { %586 = vst.msk [vmem:[%s1567_s11 + $0x8] sm:$0xff] %vm584_vm7, %v571_v10  ;;  %v566_v13 = vadd.f32 %v1126_v7, %v565_v11 }
 0x3e9   :  { %585 = vst.msk [vmem:[%s1567_s11] sm:$0xff] %vm584_vm7, %v566_v13 }
 0x3ea   :  { %v1257_v16 = vpop.f32.mrf.mxu0 }
 0x3eb   :  { %v581_v19 = vadd.f32 %v1257_v16, %v1126_v7 }
 0x3ec   :  { %v575_v20 = vpop.f32.mrf.mxu0 }
 0x3ed   :  { %588 = vst.msk [vmem:[%s1567_s11 + $0x18] sm:$0xff] %vm584_vm7, %v581_v19  ;;  %v576_v21 = vadd.f32 %v1126_v7, %v575_v20 }
 0x3ee   :  { %v1264_v22 = vpop.f32.mrf.mxu0  ;;  %v1271_v23 = vpop.f32.mrf.mxu1 }
 0x3ef   :  { %587 = vst.msk [vmem:[%s1567_s11 + $0x10] sm:$0xff] %vm584_vm7, %v576_v21  ;;  %v828_v26 = vmul.f32 2.0, %v1264_v22  ;;  %v830_v27 = vmul.f32 2.0, %v1271_v23  ;;  %s1320_s11 = smov 32  }
 0x3f0   :  { %v661_v30 = vpop.f32.mrf.mxu0  ;;  %v742_v31 = vpop.f32.mrf.mxu1 }
 0x3f1   :  { %v832_v32 = vsub.f32 %v824_v24, %v828_v26  ;;  %v834_v33 = vsub.f32 %v826_v25, %v830_v27  ;;  %v827_v34 = vmul.f32 2.0, %v661_v30  ;;  %v829_v35 = vmul.f32 2.0, %v742_v31 }
 0x3f3   :  { %v836_v36 = vmax.f32 %v832_v32, 0.0  ;;  %v838_v37 = vmax.f32 %v834_v33, 0.0  ;;  %v831_v38 = vsub.f32 %v823_v28, %v827_v34  ;;  %v833_v39 = vsub.f32 %v825_v29, %v829_v35 }
 0x3f5   :  { %1287 = vrsqrt.f32 %v836_v36  ;;  %v835_v40 = vmax.f32 %v831_v38, 0.0  ;;  %v837_v41 = vmax.f32 %v833_v39, 0.0  ;;  %vm848_vm8 = vcmp.eq.f32.partialorder %v836_v36, inf }
 0x3f6   :  { %1289 = vrsqrt.f32 %v838_v37  ;;  %vm850_vm9 = vcmp.eq.f32.partialorder %v836_v36, 0.0  ;;  %v851_v53 = vand.u32 2147483648, %v836_v36  ;;  %vm862_vm10 = vcmp.eq.f32.partialorder %v838_v37, inf }
 0x3f7   :  { %1291 = vrsqrt.f32 %v835_v40  ;;  %vm864_vm11 = vcmp.eq.f32.partialorder %v838_v37, 0.0  ;;  %v865_v56 = vand.u32 2147483648, %v838_v37  ;;  %vm841_vm12 = vcmp.eq.f32.partialorder %v835_v40, inf }
 0x3f8   :  { %1293 = vrsqrt.f32 %v837_v41  ;;  %vm843_vm13 = vcmp.eq.f32.partialorder %v835_v40, 0.0  ;;  %v844_v60 = vand.u32 2147483648, %v835_v40  ;;  %vm855_vm14 = vcmp.eq.f32.partialorder %v837_v41, inf }
 0x3f9   :  { %v858_v3 = vand.u32 2147483648, %v837_v41  ;;  %vm857_vm15 = vcmp.eq.f32.partialorder %v837_v41, 0.0 }
 0x402   :  { %v1288_v48 = vpop.eup %1287 }
 0x403   :  { %v1290_v51 = vpop.eup %1289  ;;  %v847_v52 = vmul.f32 %v1288_v48, %v836_v36 }
 0x404   :  { %v1292_v54 = vpop.eup %1291  ;;  %v861_v55 = vmul.f32 %v1290_v51, %v838_v37 }
 0x405   :  { %v1294_v57 = vpop.eup %1293  ;;  %v849_v58 = vsel %vm848_vm8, %v836_v36, %v847_v52  ;;  %v840_v59 = vmul.f32 %v1292_v54, %v835_v40 }
 0x406   :  { %v852_v61 = vsel %vm850_vm9, %v851_v53, %v849_v58  ;;  %v863_v62 = vsel %vm862_vm10, %v838_v37, %v861_v55  ;;  %v854_v63 = vmul.f32 %v1294_v57, %v837_v41 }
 0x407   :  { %v866_v0 = vsel %vm864_vm11, %v865_v56, %v863_v62  ;;  %v940_v1 = vrot.slane %v852_v61, %v873_v49  ;;  %v842_v2 = vsel %vm841_vm12, %v835_v40, %v840_v59  ;;  %v933_v21 = vcombine.high %v852_v61, %v1319_v12 }
 0x408   :  { %v955_v4 = vrot.slane %v866_v0, %v873_v49  ;;  %v845_v5 = vsel %vm843_vm13, %v844_v60, %v842_v2  ;;  %v856_v6 = vsel %vm855_vm14, %v837_v41, %v854_v63  ;;  %v948_v22 = vcombine.high %v866_v0, %v1319_v12 }
 0x409   :  { %v859_v7 = vsel %vm857_vm15, %v858_v3, %v856_v6  ;;  %v874_v8 = vrot.slane %v845_v5, %v873_v49  ;;  %v867_v13 = vcombine.high %v845_v5, %v1319_v12  ;;  %v947_v29 = vrot.slane %v933_v21, %v873_v49 }
 0x40a   :  { %v964_v9 = vcombine.high %v940_v1, %v955_v4  ;;  %v963_v10 = vcombine.low %v940_v1, %v955_v4  ;;  %v889_v11 = vrot.slane %v859_v7, %v873_v49  ;;  %v882_v14 = vcombine.high %v859_v7, %v1319_v12 }
 0x40b   :  { %v881_v20 = vrot.slane %v867_v13, %v873_v49  ;;  %v962_v30 = vrot.slane %v948_v22, %v873_v49 }
 0x40c   :  { %v978_v15 = vrot.slane %v964_v9, %v1541_v50  ;;  %v971_v16 = vrot.slane %v963_v10, %v1541_v50  ;;  %v897_v17 = vcombine.low %v874_v8, %v889_v11  ;;  %v898_v18 = vcombine.high %v874_v8, %v889_v11 }
 0x40d   :  { %v896_v26 = vrot.slane %v882_v14, %v873_v49  ;;  %v979_v33 = vcombine.low %v947_v29, %v962_v30  ;;  %v980_v37 = vcombine.high %v947_v29, %v962_v30 }
 0x40e   :  { %1032 = vrot.lane.b32.xlu1 %v978_v15, %s1320_s11  ;;  %v905_v19 = vrot.slane %v897_v17, %v1541_v50  ;;  %v995_v23 = vcombine.high %v971_v16, %v1319_v12  ;;  %v912_v25 = vrot.slane %v898_v18, %v1541_v50  ;;  %v996_v31 = vcombine.high %v978_v15, %v1319_v12 }
 0x40f   :  { %v913_v28 = vcombine.low %v881_v20, %v896_v26  ;;  %v914_v34 = vcombine.high %v881_v20, %v896_v26  ;;  %v987_v35 = vrot.slane %v979_v33, %v1541_v50  ;;  %v994_v38 = vrot.slane %v980_v37, %v1541_v50 }
 0x410   :  { %v929_v24 = vcombine.high %v905_v19, %v1319_v12  ;;  %v930_v27 = vcombine.high %v912_v25, %v1319_v12 }
 0x411   :  { %v921_v32 = vrot.slane %v913_v28, %v1541_v50  ;;  %v928_v36 = vrot.slane %v914_v34, %v1541_v50  ;;  %v997_v40 = vcombine.high %v987_v35, %v1319_v12  ;;  %v998_v42 = vcombine.high %v994_v38, %v1319_v12 }
 0x412   :  { %1028 = vrot.lane.b32.xlu1 %v995_v23, %s1321_s22  ;;  %1000 = vrot.lane.b32.xlu0 %v929_v24, %s1321_s22 }
 0x413   :  { %v931_v39 = vcombine.high %v921_v32, %v1319_v12  ;;  %v932_v41 = vcombine.high %v928_v36, %v1319_v12 }
 0x416   :  { %1004 = vrot.lane.b32.xlu1 %v912_v25, %s1320_s11  ;;  %1008 = vrot.lane.b32.xlu0 %v930_v27, %s1322_s23 }
 0x41a   :  { %1036 = vrot.lane.b32.xlu1 %v996_v31, %s1322_s23  ;;  %1012 = vrot.lane.b32.xlu0 %v921_v32, %s1323_s24 }
 0x41e   :  { %1040 = vrot.lane.b32.xlu1 %v987_v35, %s1323_s24  ;;  %1020 = vrot.lane.b32.xlu0 %v928_v36, %s1324_s25 }
 0x422   :  { %1048 = vrot.lane.b32.xlu1 %v994_v38, %s1324_s25  ;;  %1016 = vrot.lane.b32.xlu0 %v931_v39, %s1325_s26 }
 0x426   :  { %1044 = vrot.lane.b32.xlu1 %v997_v40, %s1325_s26  ;;  %1024 = vrot.lane.b32.xlu0 %v932_v41, %s1326_s27 }
 0x42a   :  { %1052 = vrot.lane.b32.xlu1 %v998_v42, %s1326_s27 }
 0x480   :  { %v1033_v43 = vpop.permute.xlu1 %1032 }
 0x484   :  { %v1029_v44 = vpop.permute.xlu1 %1028  ;;  %v1001_v45 = vpop.permute.xlu0 %1000 }
 0x485   :  { %v1068_v52 = vsel %vm49_vm0, %v971_v16, %v1029_v44  ;;  %v1055_v53 = vsel %vm49_vm0, %v905_v19, %v1001_v45 }
 0x486   :  { %v1069_v57 = vsel %vm1056_vm1, %v1068_v52, %v1033_v43 }
 0x488   :  { %v1005_v46 = vpop.permute.xlu1 %1004  ;;  %v1009_v47 = vpop.permute.xlu0 %1008 }
 0x489   :  { %v1057_v54 = vsel %vm1056_vm1, %v1055_v53, %v1005_v46 }
 0x48a   :  { %v1059_v58 = vsel %vm1058_vm2, %v1057_v54, %v1009_v47 }
 0x48c   :  { %v1037_v48 = vpop.permute.xlu1 %1036  ;;  %v1013_v49 = vpop.permute.xlu0 %1012 }
 0x48d   :  { %v1070_v59 = vsel %vm1058_vm2, %v1069_v57, %v1037_v48  ;;  %v1061_v60 = vsel %vm1060_vm3, %v1059_v58, %v1013_v49 }
 0x490   :  { %v1041_v51 = vpop.permute.xlu1 %1040  ;;  %v1021_v50 = vpop.permute.xlu0 %1020 }
 0x491   :  { %v1071_v61 = vsel %vm1060_vm3, %v1070_v59, %v1041_v51 }
 0x494   :  { %v1049_v55 = vpop.permute.xlu1 %1048  ;;  %v1017_v56 = vpop.permute.xlu0 %1016 }
 0x495   :  { %v1063_v63 = vsel %vm1062_vm4, %v1061_v60, %v1017_v56 }
 0x496   :  { %v1065_v2 = vsel %vm1064_vm5, %v1063_v63, %v1021_v50 }
 0x498   :  { %v1045_v62 = vpop.permute.xlu1 %1044  ;;  %v1025_v1 = vpop.permute.xlu0 %1024 }
 0x499   :  { %v1072_v0 = vsel %vm1062_vm4, %v1071_v61, %v1045_v62  ;;  %v1067_v5 = vsel %vm1066_vm6, %v1065_v2, %v1025_v1 }
 0x49a   :  { %v1073_v3 = vsel %vm1064_vm5, %v1072_v0, %v1049_v55 }
 0x49c   :  { %v1053_v4 = vpop.permute.xlu1 %1052 }
 0x49d   :  { %v1074_v6 = vsel %vm1066_vm6, %v1073_v3, %v1053_v4 }
 0x49e   :  { %v1077_v7 = vcombine.low %v1067_v5, %v1074_v6 }
 0x4a0   :  { %1140 = vst.sshfl [vmem:[#allocation2] sm:$0x33 pattern:$0x76325410] %v1077_v7 }
 0x4a1   :  { %1306 = shalt.err (!%p1303_p4)
}
 0x4a2   :  { %1098 = dma.vmem_to_hbm [thread:$0]  %s1096_s5, 64, %s1566_s10, [#allocation3]  }
 0x4a3   :  { %1315 = dma.done.wait [#allocation3], 64  }
 0x4a4   :  { %1316 = vsyncadd [#allocation3], 4294967232 }
 0x4a5   :  { %1108 = vsyncpa [#allocation3], 1 }

</bundles_post_ra>
